<compile_context>
chip_gen: v6e
topology: v6e:2x2x1
jax: 0.10.0
libtpu: 0.0.40
codegen_flags: <defaults>
</compile_context>

<pallas_src>
import jax
import jax.numpy as jnp
from jax.experimental import pallas as pl
from jax.experimental.pallas import tpu as pltpu


def mlp_kernel(x_ref, w1_ref, b1_ref, w2_ref, b2_ref, o_ref):
    # Linear 1 on the MXU. x arrives at its native dtype and is cast on-chip to
    # the (possibly low-precision) weight dtype; accumulation is f32.
    x = x_ref[...].astype(w1_ref.dtype)
    h = jnp.dot(x, w1_ref[...], preferred_element_type=jnp.float32)
    h = h + b1_ref[...]                 # b1 is (1, hidden) -> broadcast over rows
    h = jnp.maximum(h, 0.0)             # ReLU in f32
    # Linear 2 entirely in f32 (no bf16 round-trip of the activations).
    logits = jnp.dot(h, w2_ref[...], preferred_element_type=jnp.float32)
    logits = logits + b2_ref[...]       # b2 is (1, out_dim)
    # Numerically stable softmax over the feature axis (PyTorch Softmax(dim=1)).
    m = jnp.max(logits, axis=-1, keepdims=True)
    e = jnp.exp(logits - m)
    denom = jnp.sum(e, axis=-1, keepdims=True)
    # approx reciprocal -> EUP slot (otherwise idle here); frees the VPU divide.
    o_ref[...] = (e * pl.reciprocal(denom, approx=True)).astype(o_ref.dtype)


def _round_up(n, m):
    return ((n + m - 1) // m) * m


def mlp_forward(x, w1, b1, w2, b2, *, tile_m=2048, compute_dtype=jnp.bfloat16):
    """x: (batch, input_dim); w1: (input_dim, hidden); w2: (hidden, out_dim).

    Weights are stored transposed vs. torch.nn.Linear so the kernel computes
    x @ W directly.
    """
    batch, in_dim = x.shape
    hidden = w1.shape[1]
    out_dim = w2.shape[1]

    # Batch tile: whole (sublane-rounded) batch for small inputs, else large
    # tiles (default 2048 rows) so the fixed per-grid-step cost is amortized.
    # No host-side padding: the grid is a cdiv and Pallas masks the ragged
    # last block (rows are independent; OOB rows are computed but never stored).
    if batch <= tile_m:
        tile_m = _round_up(max(batch, 1), 8)
    grid = (pl.cdiv(batch, tile_m),)

    # Tiny one-time weight casts stay in the wrapper; x stays at native dtype.
    w1c = w1.astype(compute_dtype)
    b1f = b1.astype(jnp.float32).reshape(1, hidden)
    w2f = w2.astype(jnp.float32)
    b2f = b2.astype(jnp.float32).reshape(1, out_dim)

    out = pl.pallas_call(
        mlp_kernel,
        out_shape=jax.ShapeDtypeStruct((batch, out_dim), jnp.float32),
        grid=grid,
        in_specs=[
            # x: one (tile_m, in_dim) tile per grid step, native dtype
            # (the cast to compute_dtype happens on-chip inside the kernel).
            pl.BlockSpec((tile_m, in_dim), lambda i: (i, 0)),
            # Weights / biases: same block every step -> DMA'd once, VMEM-resident.
            pl.BlockSpec((in_dim, hidden), lambda i: (0, 0)),
            pl.BlockSpec((1, hidden), lambda i: (0, 0)),
            pl.BlockSpec((hidden, out_dim), lambda i: (0, 0)),
            pl.BlockSpec((1, out_dim), lambda i: (0, 0)),
        ],
        out_specs=pl.BlockSpec((tile_m, out_dim), lambda i: (i, 0)),
        compiler_params=pltpu.CompilerParams(
            dimension_semantics=("parallel",),      # shard batch tiles across TCs (v7x)
            vmem_limit_bytes=32 * 1024 * 1024,      # safe on v5e/v6e/v7x; tile set is ~MiBs
        ),
    )(x, w1c, b1f, w2f, b2f)

    return out


if __name__ == "__main__":
    # Module hyperparameters (PyTorch defaults: hidden=20, out=2).
    input_dim, hidden_dim, output_dim = 32, 20, 2
    batch = 256

    key = jax.random.PRNGKey(0)
    kx, kw1, kb1, kw2, kb2 = jax.random.split(key, 5)

    # PyTorch Linear stores W as (out, in); we store the transpose (in, out) so
    # the kernel computes x @ W directly.
    bound1 = 1.0 / (input_dim ** 0.5)
    w1 = jax.random.uniform(kw1, (input_dim, hidden_dim), jnp.float32, -bound1, bound1)
    b1 = jax.random.uniform(kb1, (1, hidden_dim), jnp.float32, -bound1, bound1)
    bound2 = 1.0 / (hidden_dim ** 0.5)
    w2 = jax.random.uniform(kw2, (hidden_dim, output_dim), jnp.float32, -bound2, bound2)
    b2 = jax.random.uniform(kb2, (1, output_dim), jnp.float32, -bound2, bound2)

    x = jax.random.normal(kx, (batch, input_dim), jnp.float32)

    # Pure-JAX reference (same math as the PyTorch module, f32).
    def ref_fn(xv):
        h = jnp.maximum(xv @ w1 + b1, 0.0)
        return jax.nn.softmax(h @ w2 + b2, axis=1)

    ref = ref_fn(x)

    # 1) Exact-precision path (f32 MXU inputs), single full-batch tile.
    out_f32 = mlp_forward(x, w1, b1, w2, b2, compute_dtype=jnp.float32)
    jax.block_until_ready(out_f32)
    assert out_f32.shape == (batch, output_dim)
    assert jnp.allclose(out_f32, ref, atol=5e-3, rtol=5e-3)

    # 2) Default fast path (bf16 first matmul, f32 everything downstream).
    out_bf16 = mlp_forward(x, w1, b1, w2, b2)
    jax.block_until_ready(out_bf16)
    assert out_bf16.shape == (batch, output_dim)
    assert jnp.allclose(out_bf16, ref, atol=3e-2, rtol=3e-2)
    assert jnp.allclose(jnp.sum(out_bf16, axis=1), 1.0, atol=1e-2)

    # 3) Ragged multi-tile grid (no host-side pad): batch=200 with tile_m=128
    #    -> grid of 2 with a masked last block.
    x_r = jax.random.normal(kx, (200, input_dim), jnp.float32)
    out_r = mlp_forward(x_r, w1, b1, w2, b2, tile_m=128)
    jax.block_until_ready(out_r)
    assert out_r.shape == (200, output_dim)
    assert jnp.allclose(out_r, ref_fn(x_r), atol=3e-2, rtol=3e-2)

    print("KERNEL_OK")
</pallas_src>

<mosaic_0001>
module attributes {stable_mosaic.version = 11 : i64} {
  func.func @mlp_kernel(%arg0: i32, %arg1: memref<256x32xf32, #tpu.memory_space<vmem>>, %arg2: memref<32x20xf32, #tpu.memory_space<vmem>>, %arg3: memref<1x20xf32, #tpu.memory_space<vmem>>, %arg4: memref<20x2xf32, #tpu.memory_space<vmem>>, %arg5: memref<1x2xf32, #tpu.memory_space<vmem>>, %arg6: memref<256x2xf32, #tpu.memory_space<vmem>>) attributes {dimension_semantics = [#tpu.dimension_semantics<parallel>], iteration_bounds = array<i64: 1>, scalar_prefetch = 0 : i64, scratch_operands = 0 : i64, tpu.core_type = #tpu.core_type<tc>, window_params = [{transform_indices = @transform_0, window_bounds = array<i64: 256, 32>}, {pipeline_mode = #tpu.pipeline_mode<synchronous>, transform_indices = @transform_1, window_bounds = array<i64: 32, 20>}, {pipeline_mode = #tpu.pipeline_mode<synchronous>, transform_indices = @transform_2, window_bounds = array<i64: 1, 20>}, {pipeline_mode = #tpu.pipeline_mode<synchronous>, transform_indices = @transform_3, window_bounds = array<i64: 20, 2>}, {pipeline_mode = #tpu.pipeline_mode<synchronous>, transform_indices = @transform_4, window_bounds = array<i64: 1, 2>}, {transform_indices = @transform_5, window_bounds = array<i64: 256, 2>}]} {
    %c0 = arith.constant 0 : index
    %c0_0 = arith.constant 0 : index
    %0 = vector.load %arg1[%c0, %c0_0] : memref<256x32xf32, #tpu.memory_space<vmem>>, vector<256x32xf32>
    %c0_1 = arith.constant 0 : index
    %c0_2 = arith.constant 0 : index
    %1 = vector.load %arg2[%c0_1, %c0_2] : memref<32x20xf32, #tpu.memory_space<vmem>>, vector<32x20xf32>
    %cst = arith.constant dense<0.000000e+00> : vector<256x20xf32>
    %2 = tpu.matmul %0, %1, %cst {dimension_numbers = #tpu.dot_dimension_numbers<[1], [0], [0], [1], [0, 0, 1, 1], [], []>} : vector<256x32xf32>, vector<32x20xf32>, vector<256x20xf32> -> vector<256x20xf32>
    %c0_3 = arith.constant 0 : index
    %c0_4 = arith.constant 0 : index
    %3 = vector.load %arg3[%c0_3, %c0_4] : memref<1x20xf32, #tpu.memory_space<vmem>>, vector<1x20xf32>
    %4 = vector.broadcast %3 : vector<1x20xf32> to vector<256x20xf32>
    %5 = arith.addf %2, %4 : vector<256x20xf32>
    %cst_5 = arith.constant 0.000000e+00 : f32
    %6 = vector.broadcast %cst_5 : f32 to vector<256x20xf32>
    %7 = arith.maximumf %5, %6 : vector<256x20xf32>
    %c0_6 = arith.constant 0 : index
    %c0_7 = arith.constant 0 : index
    %8 = vector.load %arg4[%c0_6, %c0_7] : memref<20x2xf32, #tpu.memory_space<vmem>>, vector<20x2xf32>
    %cst_8 = arith.constant dense<0.000000e+00> : vector<256x2xf32>
    %9 = tpu.matmul %7, %8, %cst_8 {dimension_numbers = #tpu.dot_dimension_numbers<[1], [0], [0], [1], [0, 0, 1, 1], [], []>} : vector<256x20xf32>, vector<20x2xf32>, vector<256x2xf32> -> vector<256x2xf32>
    %c0_9 = arith.constant 0 : index
    %c0_10 = arith.constant 0 : index
    %10 = vector.load %arg5[%c0_9, %c0_10] : memref<1x2xf32, #tpu.memory_space<vmem>>, vector<1x2xf32>
    %11 = vector.broadcast %10 : vector<1x2xf32> to vector<256x2xf32>
    %12 = arith.addf %9, %11 : vector<256x2xf32>
    %cst_11 = arith.constant dense<0xFF800000> : vector<256xf32>
    %13 = vector.multi_reduction <maximumf>, %12, %cst_11 [1] : vector<256x2xf32> to vector<256xf32>
    %14 = vector.shape_cast %13 : vector<256xf32> to vector<256x1xf32>
    %15 = vector.broadcast %14 : vector<256x1xf32> to vector<256x2xf32>
    %16 = arith.subf %12, %15 : vector<256x2xf32>
    %17 = math.exp %16 : vector<256x2xf32>
    %cst_12 = arith.constant dense<0.000000e+00> : vector<256xf32>
    %18 = vector.multi_reduction <add>, %17, %cst_12 [1] : vector<256x2xf32> to vector<256xf32>
    %19 = vector.shape_cast %18 : vector<256xf32> to vector<256x1xf32>
    %20 = tpu.reciprocal %19 {approx = true} : vector<256x1xf32> -> vector<256x1xf32>
    %21 = vector.broadcast %20 : vector<256x1xf32> to vector<256x2xf32>
    %22 = arith.mulf %17, %21 : vector<256x2xf32>
    %c0_13 = arith.constant 0 : index
    %c0_14 = arith.constant 0 : index
    %23 = vector.load %arg6[%c0_13, %c0_14] : memref<256x2xf32, #tpu.memory_space<vmem>>, vector<256x2xf32>
    tpu.vector_store %arg6[%c0_13, %c0_14], %22 {strides = array<i32>} : memref<256x2xf32, #tpu.memory_space<vmem>>, vector<256x2xf32>,
    return
  }
  func.func @transform_0(%arg0: i32) -> (i32, i32) {
    %c0_i32 = arith.constant 0 : i32
    %c0_i32_0 = arith.constant 0 : i32
    return %arg0, %c0_i32 : i32, i32
  }
  func.func @transform_1(%arg0: i32) -> (i32, i32) {
    %c0_i32 = arith.constant 0 : i32
    %c0_i32_0 = arith.constant 0 : i32
    %c0_i32_1 = arith.constant 0 : i32
    return %c0_i32, %c0_i32_0 : i32, i32
  }
  func.func @transform_2(%arg0: i32) -> (i32, i32) {
    %c0_i32 = arith.constant 0 : i32
    %c0_i32_0 = arith.constant 0 : i32
    %c0_i32_1 = arith.constant 0 : i32
    return %c0_i32, %c0_i32_0 : i32, i32
  }
  func.func @transform_3(%arg0: i32) -> (i32, i32) {
    %c0_i32 = arith.constant 0 : i32
    %c0_i32_0 = arith.constant 0 : i32
    %c0_i32_1 = arith.constant 0 : i32
    return %c0_i32, %c0_i32_0 : i32, i32
  }
  func.func @transform_4(%arg0: i32) -> (i32, i32) {
    %c0_i32 = arith.constant 0 : i32
    %c0_i32_0 = arith.constant 0 : i32
    %c0_i32_1 = arith.constant 0 : i32
    return %c0_i32, %c0_i32_0 : i32, i32
  }
  func.func @transform_5(%arg0: i32) -> (i32, i32) {
    %c0_i32 = arith.constant 0 : i32
    %c0_i32_0 = arith.constant 0 : i32
    return %arg0, %c0_i32 : i32, i32
  }
}

</mosaic_0001>

<bundles_post_ra>
// kernel: tpu_custom_call.1
= control target key start
LH: loop header
LB: loop body
LE: loop exit
PB: predicated region body
PF: predicated region fallthrough
CT: control target
= control target key end

     0   :  { %vm63_vm0 = vcmask 261120   ;;  %vm524_vm1 = vcmask 1043456   ;;  %vm427_vm2 = vcmask 162816   ;;  %vm753_vm3 = vcmask 15360   ;;  %s2251_s1 = inlined_call_operand.vmem [shape: f32[32,20], index: 1, kind: input, shape index: {}]   ;;  %s2252_s0 = inlined_call_operand.vmem [shape: f32[256,32], index: 0, kind: input, shape index: {}]   ;;  %s2253_s3 = inlined_call_operand.vmem [shape: f32[20,2], index: 3, kind: input, shape index: {}]   ;;  %s2254_s2 = inlined_call_operand.vmem [shape: f32[1,20], index: 2, kind: input, shape index: {}]   ;;  %s2255_s4 = inlined_call_operand.vmem [shape: f32[1,2], index: 4, kind: input, shape index: {}]   ;;  %s2256_s5 = inlined_call_operand.vmem [shape: f32[256,2], index: 5, kind: output, shape index: {}]  }
   0x1   :  { %v55_v0 = vld [vmem:[%s2251_s1 + $0x18] sm:$0xff]  ;;  %v54_v1 = vld [vmem:[%s2251_s1 + $0x10] sm:$0xff]  ;;  %v20_v2 = vld [vmem:[%s2252_s0] sm:$0xff] }
   0x2   :  { %1280 = vmatprep.subr.mxu0 %v55_v0  ;;  %v53_v3 = vld [vmem:[%s2251_s1 + $0x8] sm:$0xff]  ;;  %1288 = vmatprep.mubr.msk.f32.mxu0 %vm63_vm0, %v20_v2  ;;  %v52_v4 = vld [vmem:[%s2251_s1] sm:$0xff]  ;;  %v22_v6 = vld [vmem:[%s2252_s0 + $0x10] sm:$0xff] }
   0x3   :  { %1281 = vmatpush3.msra.mxu0 %v55_v0  ;;  %v21_v5 = vld [vmem:[%s2252_s0 + $0x8] sm:$0xff]  ;;  %v23_v7 = vld [vmem:[%s2252_s0 + $0x18] sm:$0xff]  ;;  %v24_v8 = vld [vmem:[%s2252_s0 + $0x20] sm:$0xff] }
   0x4   :  { %1282 = vmatprep.subr.mxu0 %v54_v1  ;;  %v25_v9 = vld [vmem:[%s2252_s0 + $0x28] sm:$0xff]  ;;  %v26_v10 = vld [vmem:[%s2252_s0 + $0x30] sm:$0xff]  ;;  %v27_v11 = vld [vmem:[%s2252_s0 + $0x38] sm:$0xff] }
   0x5   :  { %1283 = vmatpush3.msra.mxu0 %v54_v1  ;;  %v28_v12 = vld [vmem:[%s2252_s0 + $0x40] sm:$0xff]  ;;  %v29_v13 = vld [vmem:[%s2252_s0 + $0x48] sm:$0xff]  ;;  %v30_v14 = vld [vmem:[%s2252_s0 + $0x50] sm:$0xff] }
   0x6   :  { %1284 = vmatprep.subr.mxu0 %v53_v3  ;;  %v31_v15 = vld [vmem:[%s2252_s0 + $0x58] sm:$0xff]  ;;  %v32_v16 = vld [vmem:[%s2252_s0 + $0x60] sm:$0xff]  ;;  %v33_v17 = vld [vmem:[%s2252_s0 + $0x68] sm:$0xff] }
   0x7   :  { %1285 = vmatpush3.msra.mxu0 %v53_v3  ;;  %v34_v18 = vld [vmem:[%s2252_s0 + $0x70] sm:$0xff]  ;;  %v35_v19 = vld [vmem:[%s2252_s0 + $0x78] sm:$0xff]  ;;  %v36_v20 = vld [vmem:[%s2252_s0 + $0x80] sm:$0xff] }
   0x8   :  { %1286 = vmatprep.subr.mxu0 %v52_v4  ;;  %v37_v21 = vld [vmem:[%s2252_s0 + $0x88] sm:$0xff]  ;;  %v38_v22 = vld [vmem:[%s2252_s0 + $0x90] sm:$0xff]  ;;  %v39_v23 = vld [vmem:[%s2252_s0 + $0x98] sm:$0xff] }
   0x9   :  { %1287 = vmatpush3.msra.mxu0 %v52_v4  ;;  %v40_v24 = vld [vmem:[%s2252_s0 + $0xa0] sm:$0xff]  ;;  %v41_v25 = vld [vmem:[%s2252_s0 + $0xa8] sm:$0xff]  ;;  %v42_v26 = vld [vmem:[%s2252_s0 + $0xb0] sm:$0xff] }
   0xa   :  { %1289 = vmatmul.mubr.msk.f32.vlgmr.msra.gmra.mxu0 %vm63_vm0, %v21_v5  ;;  %v43_v27 = vld [vmem:[%s2252_s0 + $0xb8] sm:$0xff]  ;;  %v44_v28 = vld [vmem:[%s2252_s0 + $0xc0] sm:$0xff]  ;;  %v45_v29 = vld [vmem:[%s2252_s0 + $0xc8] sm:$0xff] }
   0xb   :  { %1291 = vmatprep.mubr.msk.f32.mxu0 %vm63_vm0, %v22_v6  ;;  %v46_v30 = vld [vmem:[%s2252_s0 + $0xd0] sm:$0xff]  ;;  %v47_v31 = vld [vmem:[%s2252_s0 + $0xd8] sm:$0xff]  ;;  %v48_v32 = vld [vmem:[%s2252_s0 + $0xe0] sm:$0xff] }
   0xc   :  { %v49_v33 = vld [vmem:[%s2252_s0 + $0xe8] sm:$0xff]  ;;  %v50_v34 = vld [vmem:[%s2252_s0 + $0xf0] sm:$0xff]  ;;  %v51_v35 = vld [vmem:[%s2252_s0 + $0xf8] sm:$0xff] }
   0xd   :  { %v419_v36 = vld [vmem:[%s2253_s3 + $0x10] sm:$0xf]  ;;  %v418_v37 = vld [vmem:[%s2253_s3 + $0x8] sm:$0xff]  ;;  %v417_v38 = vld [vmem:[%s2253_s3] sm:$0xff] }
   0xe   :  { %1292 = vmatmul.mubr.msk.f32.gmra.mxu0 %vm63_vm0, %v23_v7  ;;  %1336 = vmatprep.subr.msk.mxu1 %vm524_vm1, %v419_v36  ;;  %v1700_v39 = vld [vmem:[%s2254_s2] ss:$0 sm:$0xff] }
   0xf   :  { %1294 = vmatprep.mubr.msk.f32.mxu0 %vm63_vm0, %v24_v8  ;;  %1337 = vmatpush3.msk.msra.mxu1 %vm524_vm1, %v419_v36 }
  0x10   :  { %1338 = vmatprep.subr.mxu1 %v418_v37 }
  0x11   :  { %1339 = vmatpush3.msra.mxu1 %v418_v37 }
  0x12   :  { %1295 = vmatmul.mubr.msk.f32.gmra.mxu0 %vm63_vm0, %v25_v9  ;;  %1340 = vmatprep.subr.mxu1 %v417_v38 }
  0x13   :  { %1297 = vmatprep.mubr.msk.f32.mxu0 %vm63_vm0, %v26_v10  ;;  %1341 = vmatpush3.msra.mxu1 %v417_v38 }
  0x16   :  { %1298 = vmatmul.mubr.msk.f32.gmra.mxu0 %vm63_vm0, %v27_v11 }
  0x17   :  { %1300 = vmatprep.mubr.msk.f32.mxu0 %vm63_vm0, %v28_v12 }
  0x1a   :  { %1301 = vmatmul.mubr.msk.f32.gmra.mxu0 %vm63_vm0, %v29_v13 }
  0x1b   :  { %1303 = vmatprep.mubr.msk.f32.mxu0 %vm63_vm0, %v30_v14 }
  0x1e   :  { %1304 = vmatmul.mubr.msk.f32.gmra.mxu0 %vm63_vm0, %v31_v15 }
  0x1f   :  { %1306 = vmatprep.mubr.msk.f32.mxu0 %vm63_vm0, %v32_v16 }
  0x22   :  { %1307 = vmatmul.mubr.msk.f32.gmra.mxu0 %vm63_vm0, %v33_v17 }
  0x23   :  { %1309 = vmatprep.mubr.msk.f32.mxu0 %vm63_vm0, %v34_v18 }
  0x26   :  { %1310 = vmatmul.mubr.msk.f32.gmra.mxu0 %vm63_vm0, %v35_v19 }
  0x27   :  { %1312 = vmatprep.mubr.msk.f32.mxu0 %vm63_vm0, %v36_v20 }
  0x2a   :  { %1313 = vmatmul.mubr.msk.f32.gmra.mxu0 %vm63_vm0, %v37_v21 }
  0x2b   :  { %1315 = vmatprep.mubr.msk.f32.mxu0 %vm63_vm0, %v38_v22 }
  0x2e   :  { %1316 = vmatmul.mubr.msk.f32.gmra.mxu0 %vm63_vm0, %v39_v23 }
  0x2f   :  { %1318 = vmatprep.mubr.msk.f32.mxu0 %vm63_vm0, %v40_v24 }
  0x32   :  { %1319 = vmatmul.mubr.msk.f32.gmra.mxu0 %vm63_vm0, %v41_v25 }
  0x33   :  { %1321 = vmatprep.mubr.msk.f32.mxu0 %vm63_vm0, %v42_v26 }
  0x36   :  { %1322 = vmatmul.mubr.msk.f32.gmra.mxu0 %vm63_vm0, %v43_v27 }
  0x37   :  { %1324 = vmatprep.mubr.msk.f32.mxu0 %vm63_vm0, %v44_v28 }
  0x3a   :  { %1325 = vmatmul.mubr.msk.f32.gmra.mxu0 %vm63_vm0, %v45_v29 }
  0x3b   :  { %1327 = vmatprep.mubr.msk.f32.mxu0 %vm63_vm0, %v46_v30 }
  0x3e   :  { %1328 = vmatmul.mubr.msk.f32.gmra.mxu0 %vm63_vm0, %v47_v31 }
  0x3f   :  { %1330 = vmatprep.mubr.msk.f32.mxu0 %vm63_vm0, %v48_v32 }
  0x42   :  { %1331 = vmatmul.mubr.msk.f32.gmra.mxu0 %vm63_vm0, %v49_v33 }
  0x43   :  { %1333 = vmatprep.mubr.msk.f32.mxu0 %vm63_vm0, %v50_v34 }
  0x46   :  { %1334 = vmatmul.mubr.msk.f32.gmra.mxu0 %vm63_vm0, %v51_v35 }
  0xca   :  { %v1290_v40 = vpop.f32.mrf.mxu0 }
  0xcb   :  { %v232_v41 = vadd.f32 %v1290_v40, %v1700_v39 }
  0xcc   :  { %v226_v42 = vpop.f32.mrf.mxu0 }
  0xcd   :  { %v227_v43 = vadd.f32 %v1700_v39, %v226_v42  ;;  %v386_v46 = vmax.f32 %v232_v41, 0.0 }
  0xce   :  { %v1293_v44 = vpop.f32.mrf.mxu0 }
  0xcf   :  { %v385_v45 = vmax.f32 %v227_v43, 0.0  ;;  %v242_v47 = vadd.f32 %v1293_v44, %v1700_v39 }
  0xd0   :  { %v236_v48 = vpop.f32.mrf.mxu0 }
  0xd1   :  { %v237_v49 = vadd.f32 %v1700_v39, %v236_v48  ;;  %1342 = vmatprep.mubr.msk.f32.mxu1 %vm427_vm2, %v385_v45  ;;  %v388_v53 = vmax.f32 %v242_v47, 0.0 }
  0xd2   :  { %v1296_v50 = vpop.f32.mrf.mxu0  ;;  %1343 = vmatmul.mubr.msk.f32.vlgmr.msra.gmra.mxu1 %vm427_vm2, %v386_v46 }
  0xd3   :  { %v387_v51 = vmax.f32 %v237_v49, 0.0  ;;  %v252_v52 = vadd.f32 %v1296_v50, %v1700_v39 }
  0xd4   :  { %v246_v54 = vpop.f32.mrf.mxu0 }
  0xd5   :  { %v247_v55 = vadd.f32 %v1700_v39, %v246_v54  ;;  %1345 = vmatprep.mubr.msk.f32.mxu1 %vm427_vm2, %v387_v51  ;;  %v390_v56 = vmax.f32 %v252_v52, 0.0 }
  0xd6   :  { %v1299_v57 = vpop.f32.mrf.mxu0  ;;  %1346 = vmatmul.mubr.msk.f32.gmra.mxu1 %vm427_vm2, %v388_v53 }
  0xd7   :  { %v389_v58 = vmax.f32 %v247_v55, 0.0  ;;  %v262_v59 = vadd.f32 %v1299_v57, %v1700_v39 }
  0xd8   :  { %v256_v60 = vpop.f32.mrf.mxu0 }
  0xd9   :  { %v257_v61 = vadd.f32 %v1700_v39, %v256_v60  ;;  %1348 = vmatprep.mubr.msk.f32.mxu1 %vm427_vm2, %v389_v58  ;;  %v392_v62 = vmax.f32 %v262_v59, 0.0 }
  0xda   :  { %v1302_v63 = vpop.f32.mrf.mxu0  ;;  %1349 = vmatmul.mubr.msk.f32.gmra.mxu1 %vm427_vm2, %v390_v56 }
  0xdb   :  { %v391_v0 = vmax.f32 %v257_v61, 0.0  ;;  %v272_v1 = vadd.f32 %v1302_v63, %v1700_v39 }
  0xdc   :  { %v266_v2 = vpop.f32.mrf.mxu0 }
  0xdd   :  { %v267_v3 = vadd.f32 %v1700_v39, %v266_v2  ;;  %1351 = vmatprep.mubr.msk.f32.mxu1 %vm427_vm2, %v391_v0  ;;  %v394_v4 = vmax.f32 %v272_v1, 0.0 }
  0xde   :  { %v1305_v5 = vpop.f32.mrf.mxu0  ;;  %1352 = vmatmul.mubr.msk.f32.gmra.mxu1 %vm427_vm2, %v392_v62 }
  0xdf   :  { %v393_v6 = vmax.f32 %v267_v3, 0.0  ;;  %v282_v7 = vadd.f32 %v1305_v5, %v1700_v39 }
  0xe0   :  { %v276_v8 = vpop.f32.mrf.mxu0 }
  0xe1   :  { %v277_v9 = vadd.f32 %v1700_v39, %v276_v8  ;;  %1354 = vmatprep.mubr.msk.f32.mxu1 %vm427_vm2, %v393_v6  ;;  %v396_v10 = vmax.f32 %v282_v7, 0.0 }
  0xe2   :  { %v1308_v11 = vpop.f32.mrf.mxu0  ;;  %1355 = vmatmul.mubr.msk.f32.gmra.mxu1 %vm427_vm2, %v394_v4 }
  0xe3   :  { %v395_v12 = vmax.f32 %v277_v9, 0.0  ;;  %v292_v13 = vadd.f32 %v1308_v11, %v1700_v39  ;;  %v1769_v9 = vld [vmem:[%s2255_s4] ss:$0 sm:$0xff] }
  0xe4   :  { %v286_v14 = vpop.f32.mrf.mxu0 }
  0xe5   :  { %v287_v15 = vadd.f32 %v1700_v39, %v286_v14  ;;  %1357 = vmatprep.mubr.msk.f32.mxu1 %vm427_vm2, %v395_v12  ;;  %v398_v16 = vmax.f32 %v292_v13, 0.0 }
  0xe6   :  { %v1311_v17 = vpop.f32.mrf.mxu0  ;;  %1358 = vmatmul.mubr.msk.f32.gmra.mxu1 %vm427_vm2, %v396_v10 }
  0xe7   :  { %v397_v18 = vmax.f32 %v287_v15, 0.0  ;;  %v302_v19 = vadd.f32 %v1311_v17, %v1700_v39 }
  0xe8   :  { %v296_v20 = vpop.f32.mrf.mxu0 }
  0xe9   :  { %v297_v21 = vadd.f32 %v1700_v39, %v296_v20  ;;  %1360 = vmatprep.mubr.msk.f32.mxu1 %vm427_vm2, %v397_v18  ;;  %v400_v22 = vmax.f32 %v302_v19, 0.0 }
  0xea   :  { %v1314_v23 = vpop.f32.mrf.mxu0  ;;  %1361 = vmatmul.mubr.msk.f32.gmra.mxu1 %vm427_vm2, %v398_v16 }
  0xeb   :  { %v399_v24 = vmax.f32 %v297_v21, 0.0  ;;  %v312_v25 = vadd.f32 %v1314_v23, %v1700_v39 }
  0xec   :  { %v306_v26 = vpop.f32.mrf.mxu0 }
  0xed   :  { %v307_v27 = vadd.f32 %v1700_v39, %v306_v26  ;;  %1363 = vmatprep.mubr.msk.f32.mxu1 %vm427_vm2, %v399_v24  ;;  %v402_v28 = vmax.f32 %v312_v25, 0.0 }
  0xee   :  { %v1317_v29 = vpop.f32.mrf.mxu0  ;;  %1364 = vmatmul.mubr.msk.f32.gmra.mxu1 %vm427_vm2, %v400_v22 }
  0xef   :  { %v401_v30 = vmax.f32 %v307_v27, 0.0  ;;  %v322_v31 = vadd.f32 %v1317_v29, %v1700_v39 }
  0xf0   :  { %v316_v32 = vpop.f32.mrf.mxu0 }
  0xf1   :  { %v317_v33 = vadd.f32 %v1700_v39, %v316_v32  ;;  %1366 = vmatprep.mubr.msk.f32.mxu1 %vm427_vm2, %v401_v30  ;;  %v404_v34 = vmax.f32 %v322_v31, 0.0 }
  0xf2   :  { %v1320_v35 = vpop.f32.mrf.mxu0  ;;  %1367 = vmatmul.mubr.msk.f32.gmra.mxu1 %vm427_vm2, %v402_v28 }
  0xf3   :  { %v403_v36 = vmax.f32 %v317_v33, 0.0  ;;  %v332_v37 = vadd.f32 %v1320_v35, %v1700_v39 }
  0xf4   :  { %v326_v38 = vpop.f32.mrf.mxu0 }
  0xf5   :  { %v327_v40 = vadd.f32 %v1700_v39, %v326_v38  ;;  %1369 = vmatprep.mubr.msk.f32.mxu1 %vm427_vm2, %v403_v36  ;;  %v406_v41 = vmax.f32 %v332_v37, 0.0 }
  0xf6   :  { %v1323_v42 = vpop.f32.mrf.mxu0  ;;  %1370 = vmatmul.mubr.msk.f32.gmra.mxu1 %vm427_vm2, %v404_v34 }
  0xf7   :  { %v405_v43 = vmax.f32 %v327_v40, 0.0  ;;  %v342_v44 = vadd.f32 %v1323_v42, %v1700_v39 }
  0xf8   :  { %v336_v45 = vpop.f32.mrf.mxu0 }
  0xf9   :  { %v337_v46 = vadd.f32 %v1700_v39, %v336_v45  ;;  %1372 = vmatprep.mubr.msk.f32.mxu1 %vm427_vm2, %v405_v43  ;;  %v408_v47 = vmax.f32 %v342_v44, 0.0 }
  0xfa   :  { %v1326_v48 = vpop.f32.mrf.mxu0  ;;  %1373 = vmatmul.mubr.msk.f32.gmra.mxu1 %vm427_vm2, %v406_v41 }
  0xfb   :  { %v407_v49 = vmax.f32 %v337_v46, 0.0  ;;  %v352_v50 = vadd.f32 %v1326_v48, %v1700_v39 }
  0xfc   :  { %v346_v51 = vpop.f32.mrf.mxu0 }
  0xfd   :  { %v347_v52 = vadd.f32 %v1700_v39, %v346_v51  ;;  %1375 = vmatprep.mubr.msk.f32.mxu1 %vm427_vm2, %v407_v49  ;;  %v410_v53 = vmax.f32 %v352_v50, 0.0 }
  0xfe   :  { %v1329_v54 = vpop.f32.mrf.mxu0  ;;  %1376 = vmatmul.mubr.msk.f32.gmra.mxu1 %vm427_vm2, %v408_v47 }
  0xff   :  { %v409_v55 = vmax.f32 %v347_v52, 0.0  ;;  %v362_v56 = vadd.f32 %v1329_v54, %v1700_v39 }
 0x100   :  { %v356_v57 = vpop.f32.mrf.mxu0 }
 0x101   :  { %v357_v58 = vadd.f32 %v1700_v39, %v356_v57  ;;  %1378 = vmatprep.mubr.msk.f32.mxu1 %vm427_vm2, %v409_v55  ;;  %v412_v59 = vmax.f32 %v362_v56, 0.0 }
 0x102   :  { %v1332_v60 = vpop.f32.mrf.mxu0  ;;  %1379 = vmatmul.mubr.msk.f32.gmra.mxu1 %vm427_vm2, %v410_v53 }
 0x103   :  { %v411_v61 = vmax.f32 %v357_v58, 0.0  ;;  %v372_v62 = vadd.f32 %v1332_v60, %v1700_v39 }
 0x104   :  { %v366_v63 = vpop.f32.mrf.mxu0 }
 0x105   :  { %v367_v0 = vadd.f32 %v1700_v39, %v366_v63  ;;  %1381 = vmatprep.mubr.msk.f32.mxu1 %vm427_vm2, %v411_v61  ;;  %v414_v1 = vmax.f32 %v372_v62, 0.0 }
 0x106   :  { %v1335_v2 = vpop.f32.mrf.mxu0  ;;  %1382 = vmatmul.mubr.msk.f32.gmra.mxu1 %vm427_vm2, %v412_v59 }
 0x107   :  { %v413_v3 = vmax.f32 %v367_v0, 0.0  ;;  %v382_v4 = vadd.f32 %v1335_v2, %v1700_v39 }
 0x108   :  { %v376_v5 = vpop.f32.mrf.mxu0 }
 0x109   :  { %v377_v6 = vadd.f32 %v1700_v39, %v376_v5  ;;  %1384 = vmatprep.mubr.msk.f32.mxu1 %vm427_vm2, %v413_v3  ;;  %v416_v7 = vmax.f32 %v382_v4, 0.0 }
 0x10a   :  { %1385 = vmatmul.mubr.msk.f32.gmra.mxu1 %vm427_vm2, %v414_v1 }
 0x10b   :  { %v415_v8 = vmax.f32 %v377_v6, 0.0 }
 0x10d   :  { %1387 = vmatprep.mubr.msk.f32.mxu1 %vm427_vm2, %v415_v8 }
 0x10e   :  { %1388 = vmatmul.mubr.msk.f32.gmra.mxu1 %vm427_vm2, %v416_v7 }
 0x192   :  { %v1344_v10 = vpop.f32.mrf.mxu1 }
 0x193   :  { %v1772_v11 = vadd.f32 %v1344_v10, %v1769_v9 }
 0x194   :  { %v594_v39 = vpop.f32.mrf.mxu1 }
 0x195   :  { %v1775_v12 = vadd.f32 %v1769_v9, %v594_v39  ;;  %v757_v13 = vsel %vm753_vm3, %v1772_v11, -inf }
 0x196   :  { %758 = vmax.xlane.f32.xlu0 %v757_v13  ;;  %v1347_v14 = vpop.f32.mrf.mxu1 }
 0x197   :  { %v1780_v15 = vadd.f32 %v1347_v14, %v1769_v9  ;;  %v754_v19 = vsel %vm753_vm3, %v1775_v12, -inf }
 0x198   :  { %v604_v16 = vpop.f32.mrf.mxu1 }
 0x199   :  { %v1783_v17 = vadd.f32 %v1769_v9, %v604_v16  ;;  %v763_v18 = vsel %vm753_vm3, %v1780_v15, -inf }
 0x19a   :  { %764 = vmax.xlane.f32.xlu1 %v763_v18  ;;  %v1350_v20 = vpop.f32.mrf.mxu1  ;;  %755 = vmax.xlane.f32.xlu0 %v754_v19 }
 0x19b   :  { %v1790_v22 = vadd.f32 %v1350_v20, %v1769_v9  ;;  %v760_v24 = vsel %vm753_vm3, %v1783_v17, -inf }
 0x19c   :  { %v614_v21 = vpop.f32.mrf.mxu1 }
 0x19d   :  { %v1793_v23 = vadd.f32 %v1769_v9, %v614_v21  ;;  %v769_v30 = vsel %vm753_vm3, %v1790_v22, -inf }
 0x19e   :  { %v1353_v25 = vpop.f32.mrf.mxu1  ;;  %761 = vmax.xlane.f32.xlu1 %v760_v24 }
 0x19f   :  { %v766_v26 = vsel %vm753_vm3, %v1793_v23, -inf  ;;  %v1800_v28 = vadd.f32 %v1353_v25, %v1769_v9 }
 0x1a0   :  { %v624_v27 = vpop.f32.mrf.mxu1  ;;  %767 = vmax.xlane.f32.xlu0 %v766_v26 }
 0x1a1   :  { %v1803_v29 = vadd.f32 %v1769_v9, %v624_v27  ;;  %v775_v36 = vsel %vm753_vm3, %v1800_v28, -inf }
 0x1a2   :  { %v1356_v31 = vpop.f32.mrf.mxu1  ;;  %770 = vmax.xlane.f32.xlu1 %v769_v30 }
 0x1a3   :  { %v772_v32 = vsel %vm753_vm3, %v1803_v29, -inf  ;;  %v1810_v34 = vadd.f32 %v1356_v31, %v1769_v9 }
 0x1a4   :  { %v634_v33 = vpop.f32.mrf.mxu1  ;;  %773 = vmax.xlane.f32.xlu0 %v772_v32 }
 0x1a5   :  { %v1813_v35 = vadd.f32 %v1769_v9, %v634_v33  ;;  %v781_v43 = vsel %vm753_vm3, %v1810_v34, -inf }
 0x1a6   :  { %v1359_v37 = vpop.f32.mrf.mxu1  ;;  %776 = vmax.xlane.f32.xlu1 %v775_v36 }
 0x1a7   :  { %v778_v38 = vsel %vm753_vm3, %v1813_v35, -inf  ;;  %v1820_v41 = vadd.f32 %v1359_v37, %v1769_v9 }
 0x1a8   :  { %v644_v40 = vpop.f32.mrf.mxu1  ;;  %779 = vmax.xlane.f32.xlu0 %v778_v38 }
 0x1a9   :  { %v1823_v42 = vadd.f32 %v1769_v9, %v644_v40  ;;  %v787_v49 = vsel %vm753_vm3, %v1820_v41, -inf }
 0x1aa   :  { %v1362_v44 = vpop.f32.mrf.mxu1  ;;  %782 = vmax.xlane.f32.xlu1 %v781_v43 }
 0x1ab   :  { %v784_v45 = vsel %vm753_vm3, %v1823_v42, -inf  ;;  %v1830_v47 = vadd.f32 %v1362_v44, %v1769_v9 }
 0x1ac   :  { %v654_v46 = vpop.f32.mrf.mxu1  ;;  %785 = vmax.xlane.f32.xlu0 %v784_v45 }
 0x1ad   :  { %v1833_v48 = vadd.f32 %v1769_v9, %v654_v46  ;;  %v793_v55 = vsel %vm753_vm3, %v1830_v47, -inf }
 0x1ae   :  { %v1365_v50 = vpop.f32.mrf.mxu1  ;;  %788 = vmax.xlane.f32.xlu1 %v787_v49 }
 0x1af   :  { %v790_v51 = vsel %vm753_vm3, %v1833_v48, -inf  ;;  %v1840_v53 = vadd.f32 %v1365_v50, %v1769_v9 }
 0x1b0   :  { %v664_v52 = vpop.f32.mrf.mxu1  ;;  %791 = vmax.xlane.f32.xlu0 %v790_v51 }
 0x1b1   :  { %v1843_v54 = vadd.f32 %v1769_v9, %v664_v52  ;;  %v799_v61 = vsel %vm753_vm3, %v1840_v53, -inf }
 0x1b2   :  { %v1368_v56 = vpop.f32.mrf.mxu1  ;;  %794 = vmax.xlane.f32.xlu1 %v793_v55 }
 0x1b3   :  { %v796_v57 = vsel %vm753_vm3, %v1843_v54, -inf  ;;  %v1850_v59 = vadd.f32 %v1368_v56, %v1769_v9 }
 0x1b4   :  { %v674_v58 = vpop.f32.mrf.mxu1  ;;  %797 = vmax.xlane.f32.xlu0 %v796_v57 }
 0x1b5   :  { %v1853_v60 = vadd.f32 %v1769_v9, %v674_v58  ;;  %v805_v3 = vsel %vm753_vm3, %v1850_v59, -inf }
 0x1b6   :  { %v1371_v62 = vpop.f32.mrf.mxu1  ;;  %800 = vmax.xlane.f32.xlu1 %v799_v61 }
 0x1b7   :  { %v802_v63 = vsel %vm753_vm3, %v1853_v60, -inf  ;;  %v1860_v1 = vadd.f32 %v1371_v62, %v1769_v9 }
 0x1b8   :  { %v684_v0 = vpop.f32.mrf.mxu1  ;;  %803 = vmax.xlane.f32.xlu0 %v802_v63 }
 0x1b9   :  { %v1863_v2 = vadd.f32 %v1769_v9, %v684_v0  ;;  %v811_v10 = vsel %vm753_vm3, %v1860_v1, -inf }
 0x1ba   :  { %v1374_v4 = vpop.f32.mrf.mxu1  ;;  %806 = vmax.xlane.f32.xlu1 %v805_v3 }
 0x1bb   :  { %v808_v5 = vsel %vm753_vm3, %v1863_v2, -inf  ;;  %v1870_v7 = vadd.f32 %v1374_v4, %v1769_v9 }
 0x1bc   :  { %v694_v6 = vpop.f32.mrf.mxu1  ;;  %809 = vmax.xlane.f32.xlu0 %v808_v5 }
 0x1bd   :  { %v1873_v8 = vadd.f32 %v1769_v9, %v694_v6  ;;  %v817_v19 = vsel %vm753_vm3, %v1870_v7, -inf }
 0x1be   :  { %v1377_v39 = vpop.f32.mrf.mxu1  ;;  %812 = vmax.xlane.f32.xlu1 %v811_v10 }
 0x1bf   :  { %v814_v13 = vsel %vm753_vm3, %v1873_v8, -inf  ;;  %v1880_v16 = vadd.f32 %v1377_v39, %v1769_v9 }
 0x1c0   :  { %v704_v14 = vpop.f32.mrf.mxu1  ;;  %815 = vmax.xlane.f32.xlu0 %v814_v13 }
 0x1c1   :  { %v1883_v18 = vadd.f32 %v1769_v9, %v704_v14  ;;  %v823_v27 = vsel %vm753_vm3, %v1880_v16, -inf }
 0x1c2   :  { %v1380_v20 = vpop.f32.mrf.mxu1  ;;  %818 = vmax.xlane.f32.xlu1 %v817_v19 }
 0x1c3   :  { %v820_v21 = vsel %vm753_vm3, %v1883_v18, -inf  ;;  %v1890_v25 = vadd.f32 %v1380_v20, %v1769_v9 }
 0x1c4   :  { %v714_v24 = vpop.f32.mrf.mxu1  ;;  %821 = vmax.xlane.f32.xlu0 %v820_v21 }
 0x1c5   :  { %v1893_v26 = vadd.f32 %v1769_v9, %v714_v24  ;;  %v829_v37 = vsel %vm753_vm3, %v1890_v25, -inf }
 0x1c6   :  { %v1383_v30 = vpop.f32.mrf.mxu1  ;;  %824 = vmax.xlane.f32.xlu1 %v823_v27 }
 0x1c7   :  { %v826_v31 = vsel %vm753_vm3, %v1893_v26, -inf  ;;  %v1900_v33 = vadd.f32 %v1383_v30, %v1769_v9 }
 0x1c8   :  { %v724_v32 = vpop.f32.mrf.mxu1  ;;  %827 = vmax.xlane.f32.xlu0 %v826_v31 }
 0x1c9   :  { %v1903_v36 = vadd.f32 %v1769_v9, %v724_v32  ;;  %v835_v46 = vsel %vm753_vm3, %v1900_v33, -inf }
 0x1ca   :  { %v1386_v38 = vpop.f32.mrf.mxu1  ;;  %830 = vmax.xlane.f32.xlu1 %v829_v37 }
 0x1cb   :  { %v832_v40 = vsel %vm753_vm3, %v1903_v36, -inf  ;;  %v1910_v44 = vadd.f32 %v1386_v38, %v1769_v9 }
 0x1cc   :  { %v734_v43 = vpop.f32.mrf.mxu1  ;;  %833 = vmax.xlane.f32.xlu0 %v832_v40 }
 0x1cd   :  { %v1913_v45 = vadd.f32 %v1769_v9, %v734_v43  ;;  %v841_v56 = vsel %vm753_vm3, %v1910_v44, -inf }
 0x1ce   :  { %v1389_v49 = vpop.f32.mrf.mxu1  ;;  %836 = vmax.xlane.f32.xlu1 %v835_v46 }
 0x1cf   :  { %v838_v50 = vsel %vm753_vm3, %v1913_v45, -inf  ;;  %v1920_v52 = vadd.f32 %v1389_v49, %v1769_v9 }
 0x1d0   :  { %v744_v51 = vpop.f32.mrf.mxu1  ;;  %839 = vmax.xlane.f32.xlu0 %v838_v50 }
 0x1d1   :  { %v1923_v55 = vadd.f32 %v1769_v9, %v744_v51  ;;  %v847_v58 = vsel %vm753_vm3, %v1920_v52, -inf }
 0x1d2   :  { %842 = vmax.xlane.f32.xlu1 %v841_v56 }
 0x1d3   :  { %v844_v57 = vsel %vm753_vm3, %v1923_v55, -inf }
 0x1d4   :  { %845 = vmax.xlane.f32.xlu0 %v844_v57 }
 0x1d6   :  { %848 = vmax.xlane.f32.xlu1 %v847_v58 }
 0x21f   :  { %v759_v61 = vpop.xlane.xlu0 %758 }
 0x220   :  { %v851_v62 = vsub.f32 %v1772_v11, %v759_v61 }
 0x222   :  { %v884_v63 = vmul.f32 1.442695, %v851_v62 }
 0x223   :  { %v765_v0 = vpop.xlane.xlu1 %764  ;;  %v756_v3 = vpop.xlane.xlu0 %755 }
 0x224   :  { %1390 = vpow2.f32 %v884_v63  ;;  %v853_v9 = vsub.f32 %v1780_v15, %v765_v0  ;;  %v850_v4 = vsub.f32 %v1775_v12, %v756_v3 }
 0x226   :  { %v888_v5 = vmul.f32 1.442695, %v853_v9  ;;  %v882_v6 = vmul.f32 1.442695, %v850_v4 }
 0x227   :  { %v762_v10 = vpop.xlane.xlu1 %761 }
 0x228   :  { %1392 = vpow2.f32 %v888_v5  ;;  %v852_v39 = vsub.f32 %v1783_v17, %v762_v10 }
 0x229   :  { %1394 = vpow2.f32 %v882_v6  ;;  %v768_v13 = vpop.xlane.xlu0 %767 }
 0x22a   :  { %v886_v14 = vmul.f32 1.442695, %v852_v39  ;;  %v854_v19 = vsub.f32 %v1793_v23, %v768_v13 }
 0x22b   :  { %v771_v11 = vpop.xlane.xlu1 %770 }
 0x22c   :  { %1396 = vpow2.f32 %v886_v14  ;;  %v890_v20 = vmul.f32 1.442695, %v854_v19  ;;  %v855_v21 = vsub.f32 %v1790_v22, %v771_v11 }
 0x22d   :  { %v774_v24 = vpop.xlane.xlu0 %773 }
 0x22e   :  { %v892_v15 = vmul.f32 1.442695, %v855_v21  ;;  %v856_v12 = vsub.f32 %v1803_v29, %v774_v24  ;;  %1398 = vpow2.f32 %v890_v20 }
 0x22f   :  { %v777_v27 = vpop.xlane.xlu1 %776 }
 0x230   :  { %1400 = vpow2.f32 %v892_v15  ;;  %v894_v30 = vmul.f32 1.442695, %v856_v12  ;;  %v857_v17 = vsub.f32 %v1800_v28, %v777_v27 }
 0x231   :  { %v1939_v31 = vpop.eup %1390  ;;  %v780_v32 = vpop.xlane.xlu0 %779 }
 0x232   :  { %v896_v37 = vmul.f32 1.442695, %v857_v17  ;;  %v858_v23 = vsub.f32 %v1813_v35, %v780_v32  ;;  %v949_v38 = vsel %vm753_vm3, %v1939_v31, 0.0  ;;  %1402 = vpow2.f32 %v894_v30 }
 0x233   :  { %950 = vadd.xlane.f32.xlu1 %v949_v38  ;;  %v783_v22 = vpop.xlane.xlu1 %782 }
 0x234   :  { %1404 = vpow2.f32 %v896_v37  ;;  %v898_v29 = vmul.f32 1.442695, %v858_v23  ;;  %v859_v40 = vsub.f32 %v1810_v34, %v783_v22 }
 0x235   :  { %v1945_v43 = vpop.eup %1392  ;;  %v786_v46 = vpop.xlane.xlu0 %785 }
 0x236   :  { %v1947_v28 = vpop.eup %1394  ;;  %v900_v49 = vmul.f32 1.442695, %v859_v40  ;;  %v860_v50 = vsub.f32 %v1823_v42, %v786_v46  ;;  %v955_v35 = vsel %vm753_vm3, %v1945_v43, 0.0  ;;  %1406 = vpow2.f32 %v898_v29 }
 0x237   :  { %956 = vadd.xlane.f32.xlu1 %v955_v35  ;;  %v789_v51 = vpop.xlane.xlu1 %788  ;;  %v946_v56 = vsel %vm753_vm3, %v1947_v28, 0.0 }
 0x238   :  { %1408 = vpow2.f32 %v900_v49  ;;  %v902_v57 = vmul.f32 1.442695, %v860_v50  ;;  %v861_v34 = vsub.f32 %v1820_v41, %v789_v51  ;;  %947 = vadd.xlane.f32.xlu0 %v946_v56 }
 0x239   :  { %v1955_v58 = vpop.eup %1396  ;;  %v792_v61 = vpop.xlane.xlu0 %791 }
 0x23a   :  { %v904_v62 = vmul.f32 1.442695, %v861_v34  ;;  %v862_v42 = vsub.f32 %v1833_v48, %v792_v61  ;;  %v952_v63 = vsel %vm753_vm3, %v1955_v58, 0.0  ;;  %1410 = vpow2.f32 %v902_v57 }
 0x23b   :  { %v795_v0 = vpop.xlane.xlu1 %794  ;;  %v1960_v3 = vpop.eup %1398 }
 0x23c   :  { %1412 = vpow2.f32 %v904_v62  ;;  %v906_v9 = vmul.f32 1.442695, %v862_v42  ;;  %v863_v4 = vsub.f32 %v1830_v47, %v795_v0  ;;  %953 = vadd.xlane.f32.xlu0 %v952_v63  ;;  %v958_v13 = vsel %vm753_vm3, %v1960_v3, 0.0 }
 0x23d   :  { %v1963_v41 = vpop.eup %1400  ;;  %v798_v5 = vpop.xlane.xlu0 %797 }
 0x23e   :  { %v908_v6 = vmul.f32 1.442695, %v863_v4  ;;  %v864_v10 = vsub.f32 %v1843_v54, %v798_v5  ;;  %v961_v48 = vsel %vm753_vm3, %v1963_v41, 0.0  ;;  %1414 = vpow2.f32 %v906_v9 }
 0x23f   :  { %962 = vadd.xlane.f32.xlu1 %v961_v48  ;;  %v801_v39 = vpop.xlane.xlu1 %800  ;;  %v1970_v14 = vpop.eup %1402 }
 0x240   :  { %1416 = vpow2.f32 %v908_v6  ;;  %v910_v47 = vmul.f32 1.442695, %v864_v10  ;;  %v865_v19 = vsub.f32 %v1840_v53, %v801_v39  ;;  %959 = vadd.xlane.f32.xlu0 %v958_v13  ;;  %v964_v12 = vsel %vm753_vm3, %v1970_v14, 0.0 }
 0x241   :  { %v1973_v11 = vpop.eup %1404  ;;  %v804_v20 = vpop.xlane.xlu0 %803 }
 0x242   :  { %v912_v54 = vmul.f32 1.442695, %v865_v19  ;;  %v866_v21 = vsub.f32 %v1853_v60, %v804_v20  ;;  %v967_v24 = vsel %vm753_vm3, %v1973_v11, 0.0  ;;  %1418 = vpow2.f32 %v910_v47 }
 0x243   :  { %968 = vadd.xlane.f32.xlu1 %v967_v24  ;;  %v807_v15 = vpop.xlane.xlu1 %806  ;;  %v1980_v27 = vpop.eup %1406 }
 0x244   :  { %1420 = vpow2.f32 %v912_v54  ;;  %v914_v53 = vmul.f32 1.442695, %v866_v21  ;;  %v867_v30 = vsub.f32 %v1850_v59, %v807_v15  ;;  %965 = vadd.xlane.f32.xlu0 %v964_v12  ;;  %v970_v22 = vsel %vm753_vm3, %v1980_v27, 0.0 }
 0x245   :  { %v1983_v17 = vpop.eup %1408  ;;  %v810_v32 = vpop.xlane.xlu0 %809 }
 0x246   :  { %v916_v60 = vmul.f32 1.442695, %v867_v30  ;;  %v868_v37 = vsub.f32 %v1863_v2, %v810_v32  ;;  %v973_v23 = vsel %vm753_vm3, %v1983_v17, 0.0  ;;  %1422 = vpow2.f32 %v914_v53 }
 0x247   :  { %974 = vadd.xlane.f32.xlu1 %v973_v23  ;;  %v813_v38 = vpop.xlane.xlu1 %812  ;;  %v1990_v29 = vpop.eup %1410 }
 0x248   :  { %1424 = vpow2.f32 %v916_v60  ;;  %v918_v59 = vmul.f32 1.442695, %v868_v37  ;;  %v869_v40 = vsub.f32 %v1860_v1, %v813_v38  ;;  %971 = vadd.xlane.f32.xlu0 %v970_v22  ;;  %v976_v56 = vsel %vm753_vm3, %v1990_v29, 0.0 }
 0x249   :  { %v1993_v46 = vpop.eup %1412  ;;  %v816_v49 = vpop.xlane.xlu0 %815 }
 0x24a   :  { %v920_v2 = vmul.f32 1.442695, %v869_v40  ;;  %v870_v50 = vsub.f32 %v1873_v8, %v816_v49  ;;  %v979_v35 = vsel %vm753_vm3, %v1993_v46, 0.0  ;;  %1426 = vpow2.f32 %v918_v59 }
 0x24b   :  { %980 = vadd.xlane.f32.xlu1 %v979_v35  ;;  %v819_v51 = vpop.xlane.xlu1 %818  ;;  %v2000_v57 = vpop.eup %1414 }
 0x24c   :  { %1428 = vpow2.f32 %v920_v2  ;;  %v922_v1 = vmul.f32 1.442695, %v870_v50  ;;  %v871_v34 = vsub.f32 %v1870_v7, %v819_v51  ;;  %977 = vadd.xlane.f32.xlu0 %v976_v56  ;;  %v982_v9 = vsel %vm753_vm3, %v2000_v57, 0.0 }
 0x24d   :  { %v2003_v61 = vpop.eup %1416  ;;  %v822_v62 = vpop.xlane.xlu0 %821 }
 0x24e   :  { %v924_v8 = vmul.f32 1.442695, %v871_v34  ;;  %v872_v42 = vsub.f32 %v1883_v18, %v822_v62  ;;  %v985_v63 = vsel %vm753_vm3, %v2003_v61, 0.0  ;;  %1430 = vpow2.f32 %v922_v1 }
 0x24f   :  { %986 = vadd.xlane.f32.xlu1 %v985_v63  ;;  %v825_v0 = vpop.xlane.xlu1 %824  ;;  %v2010_v4 = vpop.eup %1418 }
 0x250   :  { %1432 = vpow2.f32 %v924_v8  ;;  %v926_v7 = vmul.f32 1.442695, %v872_v42  ;;  %v873_v5 = vsub.f32 %v1880_v16, %v825_v0  ;;  %983 = vadd.xlane.f32.xlu0 %v982_v9  ;;  %v988_v47 = vsel %vm753_vm3, %v2010_v4, 0.0 }
 0x251   :  { %v2013_v6 = vpop.eup %1420  ;;  %v828_v10 = vpop.xlane.xlu0 %827 }
 0x252   :  { %v928_v18 = vmul.f32 1.442695, %v873_v5  ;;  %v874_v48 = vsub.f32 %v1893_v26, %v828_v10  ;;  %v991_v39 = vsel %vm753_vm3, %v2013_v6, 0.0  ;;  %1434 = vpow2.f32 %v926_v7 }
 0x253   :  { %992 = vadd.xlane.f32.xlu1 %v991_v39  ;;  %v831_v13 = vpop.xlane.xlu1 %830  ;;  %v2020_v19 = vpop.eup %1422 }
 0x254   :  { %1436 = vpow2.f32 %v928_v18  ;;  %v930_v16 = vmul.f32 1.442695, %v874_v48  ;;  %v875_v20 = vsub.f32 %v1890_v25, %v831_v13  ;;  %989 = vadd.xlane.f32.xlu0 %v988_v47  ;;  %v994_v53 = vsel %vm753_vm3, %v2020_v19, 0.0 }
 0x255   :  { %v2023_v54 = vpop.eup %1424  ;;  %v834_v21 = vpop.xlane.xlu0 %833 }
 0x256   :  { %v932_v26 = vmul.f32 1.442695, %v875_v20  ;;  %v876_v24 = vsub.f32 %v1903_v36, %v834_v21  ;;  %v997_v15 = vsel %vm753_vm3, %v2023_v54, 0.0  ;;  %1438 = vpow2.f32 %v930_v16 }
 0x257   :  { %998 = vadd.xlane.f32.xlu1 %v997_v15  ;;  %v837_v12 = vpop.xlane.xlu1 %836  ;;  %v2030_v30 = vpop.eup %1426 }
 0x258   :  { %1440 = vpow2.f32 %v932_v26  ;;  %v934_v25 = vmul.f32 1.442695, %v876_v24  ;;  %v877_v32 = vsub.f32 %v1900_v33, %v837_v12  ;;  %995 = vadd.xlane.f32.xlu0 %v994_v53  ;;  %v1000_v59 = vsel %vm753_vm3, %v2030_v30, 0.0 }
 0x259   :  { %v2033_v60 = vpop.eup %1428  ;;  %v840_v37 = vpop.xlane.xlu0 %839 }
 0x25a   :  { %v936_v36 = vmul.f32 1.442695, %v877_v32  ;;  %v878_v23 = vsub.f32 %v1913_v45, %v840_v37  ;;  %v1003_v38 = vsel %vm753_vm3, %v2033_v60, 0.0  ;;  %1442 = vpow2.f32 %v934_v25 }
 0x25b   :  { %1004 = vadd.xlane.f32.xlu1 %v1003_v38  ;;  %v843_v22 = vpop.xlane.xlu1 %842  ;;  %v2040_v40 = vpop.eup %1430 }
 0x25c   :  { %1444 = vpow2.f32 %v936_v36  ;;  %v938_v33 = vmul.f32 1.442695, %v878_v23  ;;  %v879_v49 = vsub.f32 %v1910_v44, %v843_v22  ;;  %1001 = vadd.xlane.f32.xlu0 %v1000_v59  ;;  %v1006_v1 = vsel %vm753_vm3, %v2040_v40, 0.0 }
 0x25d   :  { %v2043_v2 = vpop.eup %1432  ;;  %v846_v50 = vpop.xlane.xlu0 %845 }
 0x25e   :  { %v940_v45 = vmul.f32 1.442695, %v879_v49  ;;  %v880_v35 = vsub.f32 %v1923_v55, %v846_v50  ;;  %v1009_v51 = vsel %vm753_vm3, %v2043_v2, 0.0  ;;  %1446 = vpow2.f32 %v938_v33 }
 0x25f   :  { %1010 = vadd.xlane.f32.xlu1 %v1009_v51  ;;  %v849_v56 = vpop.xlane.xlu1 %848  ;;  %v2050_v34 = vpop.eup %1434 }
 0x260   :  { %1448 = vpow2.f32 %v940_v45  ;;  %v942_v44 = vmul.f32 1.442695, %v880_v35  ;;  %v881_v62 = vsub.f32 %v1920_v52, %v849_v56  ;;  %1007 = vadd.xlane.f32.xlu0 %v1006_v1  ;;  %v1012_v63 = vsel %vm753_vm3, %v2050_v34, 0.0 }
 0x261   :  { %v2053_v8 = vpop.eup %1436 }
 0x262   :  { %v944_v42 = vmul.f32 1.442695, %v881_v62  ;;  %v1015_v55 = vsel %vm753_vm3, %v2053_v8, 0.0  ;;  %1450 = vpow2.f32 %v942_v44 }
 0x263   :  { %1016 = vadd.xlane.f32.xlu1 %v1015_v55  ;;  %v2059_v0 = vpop.eup %1438 }
 0x264   :  { %1452 = vpow2.f32 %v944_v42  ;;  %1013 = vadd.xlane.f32.xlu0 %v1012_v63  ;;  %v1018_v7 = vsel %vm753_vm3, %v2059_v0, 0.0 }
 0x265   :  { %v2061_v9 = vpop.eup %1440 }
 0x266   :  { %v1021_v52 = vsel %vm753_vm3, %v2061_v9, 0.0 }
 0x267   :  { %1022 = vadd.xlane.f32.xlu1 %v1021_v52  ;;  %v2067_v5 = vpop.eup %1442 }
 0x268   :  { %1019 = vadd.xlane.f32.xlu0 %v1018_v7  ;;  %v1024_v48 = vsel %vm753_vm3, %v2067_v5, 0.0 }
 0x269   :  { %v2069_v10 = vpop.eup %1444 }
 0x26a   :  { %v1027_v18 = vsel %vm753_vm3, %v2069_v10, 0.0 }
 0x26b   :  { %1028 = vadd.xlane.f32.xlu1 %v1027_v18  ;;  %v2075_v39 = vpop.eup %1446 }
 0x26c   :  { %1025 = vadd.xlane.f32.xlu0 %v1024_v48  ;;  %v1030_v16 = vsel %vm753_vm3, %v2075_v39, 0.0 }
 0x26d   :  { %v2077_v13 = vpop.eup %1448 }
 0x26e   :  { %v1033_v47 = vsel %vm753_vm3, %v2077_v13, 0.0 }
 0x26f   :  { %1034 = vadd.xlane.f32.xlu1 %v1033_v47  ;;  %v2083_v20 = vpop.eup %1450 }
 0x270   :  { %1031 = vadd.xlane.f32.xlu0 %v1030_v16  ;;  %v1036_v24 = vsel %vm753_vm3, %v2083_v20, 0.0 }
 0x271   :  { %v2085_v21 = vpop.eup %1452 }
 0x272   :  { %v1039_v26 = vsel %vm753_vm3, %v2085_v21, 0.0 }
 0x273   :  { %1040 = vadd.xlane.f32.xlu1 %v1039_v26 }
 0x274   :  { %1037 = vadd.xlane.f32.xlu0 %v1036_v24 }
 0x2bc   :  { %v951_v15 = vpop.xlane.xlu1 %950 }
 0x2bd   :  { %1454 = vrcp.f32 %v951_v15 }
 0x2c0   :  { %v957_v12 = vpop.xlane.xlu1 %956 }
 0x2c1   :  { %1456 = vrcp.f32 %v957_v12  ;;  %v948_v53 = vpop.xlane.xlu0 %947 }
 0x2c2   :  { %1458 = vrcp.f32 %v948_v53 }
 0x2c5   :  { %v954_v25 = vpop.xlane.xlu0 %953 }
 0x2c6   :  { %1460 = vrcp.f32 %v954_v25 }
 0x2c8   :  { %v963_v32 = vpop.xlane.xlu1 %962 }
 0x2c9   :  { %1462 = vrcp.f32 %v963_v32  ;;  %v960_v37 = vpop.xlane.xlu0 %959 }
 0x2ca   :  { %v1455_v36 = vpop.eup %1454  ;;  %1464 = vrcp.f32 %v960_v37 }
 0x2cb   :  { %v1075_v23 = vmul.f32 %v1455_v36, %v1939_v31 }
 0x2cc   :  { %v969_v38 = vpop.xlane.xlu1 %968 }
 0x2cd   :  { %1107 = vst.msk [vmem:[%s2256_s5 + $0x8] sm:$0xff] %vm753_vm3, %v1075_v23  ;;  %1466 = vrcp.f32 %v969_v38  ;;  %v966_v22 = vpop.xlane.xlu0 %965 }
 0x2ce   :  { %v1457_v59 = vpop.eup %1456  ;;  %1468 = vrcp.f32 %v966_v22 }
 0x2cf   :  { %v1459_v33 = vpop.eup %1458  ;;  %v1077_v49 = vmul.f32 %v1457_v59, %v1945_v43 }
 0x2d0   :  { %v1074_v50 = vmul.f32 %v1459_v33, %v1947_v28  ;;  %v975_v45 = vpop.xlane.xlu1 %974 }
 0x2d1   :  { %1109 = vst.msk [vmem:[%s2256_s5 + $0x18] sm:$0xff] %vm753_vm3, %v1077_v49  ;;  %1470 = vrcp.f32 %v975_v45  ;;  %v972_v31 = vpop.xlane.xlu0 %971 }
 0x2d2   :  { %1106 = vst.msk [vmem:[%s2256_s5] sm:$0xff] %vm753_vm3, %v1074_v50  ;;  %1472 = vrcp.f32 %v972_v31 }
 0x2d3   :  { %v1461_v35 = vpop.eup %1460 }
 0x2d4   :  { %v1076_v51 = vmul.f32 %v1461_v35, %v1955_v58  ;;  %v981_v43 = vpop.xlane.xlu1 %980 }
 0x2d5   :  { %1474 = vrcp.f32 %v981_v43  ;;  %v978_v28 = vpop.xlane.xlu0 %977 }
 0x2d6   :  { %v1463_v56 = vpop.eup %1462  ;;  %1108 = vst.msk [vmem:[%s2256_s5 + $0x10] sm:$0xff] %vm753_vm3, %v1076_v51  ;;  %1476 = vrcp.f32 %v978_v28 }
 0x2d7   :  { %v1465_v1 = vpop.eup %1464  ;;  %v1079_v44 = vmul.f32 %v1463_v56, %v1963_v41 }
 0x2d8   :  { %v1078_v62 = vmul.f32 %v1465_v1, %v1960_v3  ;;  %v987_v42 = vpop.xlane.xlu1 %986 }
 0x2d9   :  { %1111 = vst.msk [vmem:[%s2256_s5 + $0x28] sm:$0xff] %vm753_vm3, %v1079_v44  ;;  %1478 = vrcp.f32 %v987_v42  ;;  %v984_v58 = vpop.xlane.xlu0 %983 }
 0x2da   :  { %v1467_v55 = vpop.eup %1466  ;;  %1110 = vst.msk [vmem:[%s2256_s5 + $0x20] sm:$0xff] %vm753_vm3, %v1078_v62  ;;  %1480 = vrcp.f32 %v984_v58 }
 0x2db   :  { %v1469_v63 = vpop.eup %1468  ;;  %v1081_v41 = vmul.f32 %v1467_v55, %v1973_v11 }
 0x2dc   :  { %v1080_v3 = vmul.f32 %v1469_v63, %v1970_v14  ;;  %v993_v52 = vpop.xlane.xlu1 %992 }
 0x2dd   :  { %1113 = vst.msk [vmem:[%s2256_s5 + $0x38] sm:$0xff] %vm753_vm3, %v1081_v41  ;;  %1482 = vrcp.f32 %v993_v52  ;;  %v990_v7 = vpop.xlane.xlu0 %989 }
 0x2de   :  { %v1471_v18 = vpop.eup %1470  ;;  %1112 = vst.msk [vmem:[%s2256_s5 + $0x30] sm:$0xff] %vm753_vm3, %v1080_v3  ;;  %1484 = vrcp.f32 %v990_v7 }
 0x2df   :  { %v1473_v48 = vpop.eup %1472  ;;  %v1083_v11 = vmul.f32 %v1471_v18, %v1983_v17 }
 0x2e0   :  { %v1082_v14 = vmul.f32 %v1473_v48, %v1980_v27  ;;  %v999_v47 = vpop.xlane.xlu1 %998 }
 0x2e1   :  { %1115 = vst.msk [vmem:[%s2256_s5 + $0x48] sm:$0xff] %vm753_vm3, %v1083_v11  ;;  %1486 = vrcp.f32 %v999_v47  ;;  %v996_v16 = vpop.xlane.xlu0 %995 }
 0x2e2   :  { %v1475_v26 = vpop.eup %1474  ;;  %1114 = vst.msk [vmem:[%s2256_s5 + $0x40] sm:$0xff] %vm753_vm3, %v1082_v14  ;;  %1488 = vrcp.f32 %v996_v16 }
 0x2e3   :  { %v1477_v24 = vpop.eup %1476  ;;  %v1085_v17 = vmul.f32 %v1475_v26, %v1993_v46 }
 0x2e4   :  { %v1084_v27 = vmul.f32 %v1477_v24, %v1990_v29  ;;  %v1005_v15 = vpop.xlane.xlu1 %1004 }
 0x2e5   :  { %1117 = vst.msk [vmem:[%s2256_s5 + $0x58] sm:$0xff] %vm753_vm3, %v1085_v17  ;;  %1490 = vrcp.f32 %v1005_v15  ;;  %v1002_v12 = vpop.xlane.xlu0 %1001 }
 0x2e6   :  { %v1479_v53 = vpop.eup %1478  ;;  %1116 = vst.msk [vmem:[%s2256_s5 + $0x50] sm:$0xff] %vm753_vm3, %v1084_v27  ;;  %1492 = vrcp.f32 %v1002_v12 }
 0x2e7   :  { %v1481_v25 = vpop.eup %1480  ;;  %v1087_v46 = vmul.f32 %v1479_v53, %v2003_v61 }
 0x2e8   :  { %v1086_v29 = vmul.f32 %v1481_v25, %v2000_v57  ;;  %v1011_v32 = vpop.xlane.xlu1 %1010 }
 0x2e9   :  { %1119 = vst.msk [vmem:[%s2256_s5 + $0x68] sm:$0xff] %vm753_vm3, %v1087_v46  ;;  %1494 = vrcp.f32 %v1011_v32  ;;  %v1008_v37 = vpop.xlane.xlu0 %1007 }
 0x2ea   :  { %v1483_v36 = vpop.eup %1482  ;;  %1118 = vst.msk [vmem:[%s2256_s5 + $0x60] sm:$0xff] %vm753_vm3, %v1086_v29  ;;  %1496 = vrcp.f32 %v1008_v37 }
 0x2eb   :  { %v1485_v23 = vpop.eup %1484  ;;  %v1089_v61 = vmul.f32 %v1483_v36, %v2013_v6 }
 0x2ec   :  { %v1088_v57 = vmul.f32 %v1485_v23, %v2010_v4  ;;  %v1017_v38 = vpop.xlane.xlu1 %1016 }
 0x2ed   :  { %1121 = vst.msk [vmem:[%s2256_s5 + $0x78] sm:$0xff] %vm753_vm3, %v1089_v61  ;;  %1498 = vrcp.f32 %v1017_v38  ;;  %v1014_v22 = vpop.xlane.xlu0 %1013 }
 0x2ee   :  { %v1487_v59 = vpop.eup %1486  ;;  %1120 = vst.msk [vmem:[%s2256_s5 + $0x70] sm:$0xff] %vm753_vm3, %v1088_v57  ;;  %1500 = vrcp.f32 %v1014_v22 }
 0x2ef   :  { %v1489_v33 = vpop.eup %1488  ;;  %v1091_v6 = vmul.f32 %v1487_v59, %v2023_v54 }
 0x2f0   :  { %v1090_v4 = vmul.f32 %v1489_v33, %v2020_v19  ;;  %v1023_v49 = vpop.xlane.xlu1 %1022 }
 0x2f1   :  { %1123 = vst.msk [vmem:[%s2256_s5 + $0x88] sm:$0xff] %vm753_vm3, %v1091_v6  ;;  %1502 = vrcp.f32 %v1023_v49  ;;  %v1020_v50 = vpop.xlane.xlu0 %1019 }
 0x2f2   :  { %v1491_v45 = vpop.eup %1490  ;;  %1122 = vst.msk [vmem:[%s2256_s5 + $0x80] sm:$0xff] %vm753_vm3, %v1090_v4  ;;  %1504 = vrcp.f32 %v1020_v50 }
 0x2f3   :  { %v1493_v31 = vpop.eup %1492  ;;  %v1093_v54 = vmul.f32 %v1491_v45, %v2033_v60 }
 0x2f4   :  { %v1092_v19 = vmul.f32 %v1493_v31, %v2030_v30  ;;  %v1029_v35 = vpop.xlane.xlu1 %1028 }
 0x2f5   :  { %1125 = vst.msk [vmem:[%s2256_s5 + $0x98] sm:$0xff] %vm753_vm3, %v1093_v54  ;;  %1506 = vrcp.f32 %v1029_v35  ;;  %v1026_v51 = vpop.xlane.xlu0 %1025 }
 0x2f6   :  { %v1495_v43 = vpop.eup %1494  ;;  %1124 = vst.msk [vmem:[%s2256_s5 + $0x90] sm:$0xff] %vm753_vm3, %v1092_v19  ;;  %1508 = vrcp.f32 %v1026_v51 }
 0x2f7   :  { %v1497_v28 = vpop.eup %1496  ;;  %v1095_v60 = vmul.f32 %v1495_v43, %v2043_v2 }
 0x2f8   :  { %v1094_v30 = vmul.f32 %v1497_v28, %v2040_v40  ;;  %v1035_v56 = vpop.xlane.xlu1 %1034 }
 0x2f9   :  { %1127 = vst.msk [vmem:[%s2256_s5 + $0xa8] sm:$0xff] %vm753_vm3, %v1095_v60  ;;  %1510 = vrcp.f32 %v1035_v56  ;;  %v1032_v1 = vpop.xlane.xlu0 %1031 }
 0x2fa   :  { %v1499_v44 = vpop.eup %1498  ;;  %1126 = vst.msk [vmem:[%s2256_s5 + $0xa0] sm:$0xff] %vm753_vm3, %v1094_v30  ;;  %1512 = vrcp.f32 %v1032_v1 }
 0x2fb   :  { %v1501_v62 = vpop.eup %1500  ;;  %v1097_v2 = vmul.f32 %v1499_v44, %v2053_v8 }
 0x2fc   :  { %v1096_v40 = vmul.f32 %v1501_v62, %v2050_v34  ;;  %v1041_v42 = vpop.xlane.xlu1 %1040 }
 0x2fd   :  { %1129 = vst.msk [vmem:[%s2256_s5 + $0xb8] sm:$0xff] %vm753_vm3, %v1097_v2  ;;  %1514 = vrcp.f32 %v1041_v42  ;;  %v1038_v58 = vpop.xlane.xlu0 %1037 }
 0x2fe   :  { %v1503_v55 = vpop.eup %1502  ;;  %1128 = vst.msk [vmem:[%s2256_s5 + $0xb0] sm:$0xff] %vm753_vm3, %v1096_v40  ;;  %1516 = vrcp.f32 %v1038_v58 }
 0x2ff   :  { %v1505_v63 = vpop.eup %1504  ;;  %v1099_v8 = vmul.f32 %v1503_v55, %v2061_v9 }
 0x300   :  { %v1098_v34 = vmul.f32 %v1505_v63, %v2059_v0 }
 0x301   :  { %1131 = vst.msk [vmem:[%s2256_s5 + $0xc8] sm:$0xff] %vm753_vm3, %v1099_v8 }
 0x302   :  { %v1507_v41 = vpop.eup %1506  ;;  %1130 = vst.msk [vmem:[%s2256_s5 + $0xc0] sm:$0xff] %vm753_vm3, %v1098_v34 }
 0x303   :  { %v1509_v3 = vpop.eup %1508  ;;  %v1101_v52 = vmul.f32 %v1507_v41, %v2069_v10 }
 0x304   :  { %v1100_v7 = vmul.f32 %v1509_v3, %v2067_v5 }
 0x305   :  { %1133 = vst.msk [vmem:[%s2256_s5 + $0xd8] sm:$0xff] %vm753_vm3, %v1101_v52 }
 0x306   :  { %v1511_v0 = vpop.eup %1510  ;;  %1132 = vst.msk [vmem:[%s2256_s5 + $0xd0] sm:$0xff] %vm753_vm3, %v1100_v7 }
 0x307   :  { %v1513_v9 = vpop.eup %1512  ;;  %v1103_v18 = vmul.f32 %v1511_v0, %v2077_v13 }
 0x308   :  { %v1102_v48 = vmul.f32 %v1513_v9, %v2075_v39 }
 0x309   :  { %1135 = vst.msk [vmem:[%s2256_s5 + $0xe8] sm:$0xff] %vm753_vm3, %v1103_v18 }
 0x30a   :  { %v1515_v5 = vpop.eup %1514  ;;  %1134 = vst.msk [vmem:[%s2256_s5 + $0xe0] sm:$0xff] %vm753_vm3, %v1102_v48 }
 0x30b   :  { %v1517_v10 = vpop.eup %1516  ;;  %v1105_v11 = vmul.f32 %v1515_v5, %v2085_v21 }
 0x30c   :  { %v1104_v14 = vmul.f32 %v1517_v10, %v2083_v20 }
 0x30d   :  { %1137 = vst.msk [vmem:[%s2256_s5 + $0xf8] sm:$0xff] %vm753_vm3, %v1105_v11 }
 0x30e   :  { %1136 = vst.msk [vmem:[%s2256_s5 + $0xf0] sm:$0xff] %vm753_vm3, %v1104_v14 }

</bundles_post_ra>
